<compile_context>
chip_gen: v5e
topology: v5e:2x2
jax: 0.10.0
libtpu: 0.0.40
codegen_flags: <defaults>
</compile_context>

<pallas_src>
import jax
import jax.numpy as jnp
from jax.experimental import pallas as pl
from jax.experimental.pallas import tpu as pltpu


def _mlp_kernel(x_ref, w1_ref, b1_ref, w2_ref, b2_ref, o_ref):
    # Layer 1: MXU matmul (f32 accumulation) + bias + ReLU on the VPU.
    h = jnp.dot(x_ref[...], w1_ref[...], preferred_element_type=jnp.float32)
    h = jnp.maximum(h + b1_ref[...], 0.0)
    # Dropout(p=0.1): identity in eval mode.
    # Layer 2: keep h in vregs (small tile, no staging), cast to weight dtype
    # so bf16 weights keep the bf16 MXU path; accumulation stays f32.
    z = jnp.dot(h.astype(w2_ref.dtype), w2_ref[...],
                preferred_element_type=jnp.float32)
    o_ref[...] = (z + b2_ref[...]).astype(o_ref.dtype)


def _mlp_kernel_staged(x_ref, w1_ref, b1_ref, w2_ref, b2_ref, o_ref, h_ref):
    # Same math, but the (bm, d3) intermediate is staged through VMEM scratch
    # (allocated in the compute dtype) so vreg pressure stays bounded at
    # bm >= 256.
    h = jnp.dot(x_ref[...], w1_ref[...], preferred_element_type=jnp.float32)
    h_ref[...] = jnp.maximum(h + b1_ref[...], 0.0).astype(h_ref.dtype)
    # Dropout(p=0.1): identity in eval mode.
    z = jnp.dot(h_ref[...], w2_ref[...], preferred_element_type=jnp.float32)
    o_ref[...] = (z + b2_ref[...]).astype(o_ref.dtype)


def discriminative_content_head(x, w1, b1, w2, b2, *, block_m=None,
                                compute_dtype=None, out_dtype=None,
                                steps_multiple=1, pad_k_to_128=False):
    """Fused eval-mode forward of DiscriminativeContentHead.

    x:  (B, input_dim)
    w1: (input_dim, d3)   == layer1.weight.T
    b1: (d3,)
    w2: (d3, d4)          == layer2.weight.T
    b2: (d4,)
    block_m:        batch tile; None -> auto (single step for B<=1024, else 512).
    compute_dtype:  e.g. jnp.bfloat16 -> bf16 MXU operands, f32 accumulation.
    out_dtype:      output store dtype; None -> x.dtype. bf16 halves writeback HBM bytes.
    steps_multiple: round the grid step count up to a multiple of this
                    (set 2 on v7x so both TensorCores stay balanced).
    """
    B, input_dim = x.shape
    d3 = w1.shape[1]
    d4 = w2.shape[1]
    if out_dtype is None:
        out_dtype = x.dtype

    # Optional contraction-dim padding to full MXU depth. Off by default: the
    # kernel is HBM-bound, not MXU-bound, and padding K=32->128 4x's x bytes.
    if pad_k_to_128 and input_dim % 128 != 0:
        k_pad = (-input_dim) % 128
        x = jnp.pad(x, ((0, 0), (0, k_pad)))
        w1 = jnp.pad(w1, ((0, k_pad), (0, 0)))
        input_dim += k_pad

    # Optional bf16 MXU operands; biases and accumulation stay f32.
    if compute_dtype is not None:
        x = x.astype(compute_dtype)
        w1 = w1.astype(compute_dtype)
        w2 = w2.astype(compute_dtype)

    # ---- Batch tile selection -------------------------------------------------
    b_sub = max(8, ((B + 7) // 8) * 8)          # B rounded up to sublane multiple
    if block_m is None:
        # Small B: one fat step (no pipeline prologue/epilogue, no per-step
        # overhead; single-TC v5e/v6e gain nothing from 2+ tiny steps).
        # Large B: 512 sits near the measured mem-bound roofline plateau.
        bm = b_sub if B <= 1024 else 512
    else:
        bm = ((max(8, min(block_m, b_sub)) + 7) // 8) * 8

    num_blocks = pl.cdiv(B, bm)
    if steps_multiple > 1:
        num_blocks = ((num_blocks + steps_multiple - 1)
                      // steps_multiple) * steps_multiple
    b_pad = num_blocks * bm
    if b_pad != B:
        x = jnp.pad(x, ((0, b_pad - B), (0, 0)))   # garbage rows sliced off below

    # Keep biases 2-D so the last two dims map cleanly onto (sublane, lane).
    b1_2d = b1.reshape(1, d3).astype(jnp.float32)
    b2_2d = b2.reshape(1, d4).astype(jnp.float32)

    # Weights/biases are identical for every grid step: keep them fully
    # resident in VMEM (single copy, no per-step DMA, no double buffering).
    resident = pl.BlockSpec(memory_space=pltpu.MemorySpace.VMEM)

    # Stage the intermediate only when the tile is big enough to risk spilling.
    staged = bm > 128
    kernel = _mlp_kernel_staged if staged else _mlp_kernel
    scratch_shapes = [pltpu.VMEM((bm, d3), w2.dtype)] if staged else []

    # ---- VMEM-limit hygiene for big-tile sweeps (v5e 16 MiB scoped default,
    # v7x 64 MiB physical). x tile is lane-padded to 128 lanes in VMEM. -------
    x_item = jnp.dtype(x.dtype).itemsize
    o_item = jnp.dtype(out_dtype).itemsize
    w_bytes = (w1.size * jnp.dtype(w1.dtype).itemsize
               + w2.size * jnp.dtype(w2.dtype).itemsize + (d3 + d4) * 4)
    vmem_est = (2 * bm * max(input_dim, 128) * x_item       # x double buffer
                + 2 * bm * max(d4, 128) * o_item            # out double buffer
                + (bm * d3 * jnp.dtype(w2.dtype).itemsize if staged else 0)
                + w_bytes)
    cp_kwargs = dict(dimension_semantics=("parallel",))
    if vmem_est > (12 << 20):
        cp_kwargs["vmem_limit_bytes"] = min(int(vmem_est * 3 // 2) + (2 << 20),
                                            64 << 20)

    out = pl.pallas_call(
        kernel,
        out_shape=jax.ShapeDtypeStruct((b_pad, d4), out_dtype),
        grid=(num_blocks,),
        in_specs=[
            pl.BlockSpec((bm, input_dim), lambda i: (i, 0)),  # x tile (pipelined)
            resident,   # w1
            resident,   # b1
            resident,   # w2
            resident,   # b2
        ],
        out_specs=pl.BlockSpec((bm, d4), lambda i: (i, 0)),   # lane-dense (d4=128)
        scratch_shapes=scratch_shapes,
        compiler_params=pltpu.CompilerParams(**cp_kwargs),
    )(x, w1, b1_2d, w2, b2_2d)

    return out[:B] if b_pad != B else out


def _reference(x, w1, b1, w2, b2):
    h = jnp.maximum(x @ w1 + b1, 0.0)
    return h @ w2 + b2


if __name__ == "__main__":
    # Shapes consistent with the module: input_dim=32, d3=256, d4=128.
    # B=250 is deliberately not a multiple of 8/128 so the run exercises
    # host-side padding, the single-step auto path, and a forced 2-step grid.
    B, input_dim, d3, d4 = 250, 32, 256, 128

    key = jax.random.PRNGKey(0)
    kx, kw1, kb1, kw2, kb2 = jax.random.split(key, 5)

    x = jax.random.normal(kx, (B, input_dim), dtype=jnp.float32)

    # Deterministic init mimicking nn.Linear's uniform(-1/sqrt(fan_in), 1/sqrt(fan_in)).
    lim1 = 1.0 / jnp.sqrt(jnp.float32(input_dim))
    lim2 = 1.0 / jnp.sqrt(jnp.float32(d3))
    # Stored as (in, out) == PyTorch weight.T
    w1 = jax.random.uniform(kw1, (input_dim, d3), jnp.float32, -lim1, lim1)
    b1 = jax.random.uniform(kb1, (d3,), jnp.float32, -lim1, lim1)
    w2 = jax.random.uniform(kw2, (d3, d4), jnp.float32, -lim2, lim2)
    b2 = jax.random.uniform(kb2, (d4,), jnp.float32, -lim2, lim2)

    ref = _reference(x, w1, b1, w2, b2)

    # 1) f32 path, auto tile (single grid step, staged intermediate): matches
    #    the PyTorch eval forward to tight tolerance.
    z_f32 = jax.block_until_ready(discriminative_content_head(x, w1, b1, w2, b2))
    assert z_f32.shape == (B, d4)
    assert jnp.allclose(z_f32, ref, atol=1e-5, rtol=1e-5)

    # 2) bf16 operands + bf16 writeback (f32 accumulation): the low-HBM-bytes
    #    configuration recommended by the perf review.
    z_bf16 = jax.block_until_ready(
        discriminative_content_head(x, w1, b1, w2, b2,
                                    compute_dtype=jnp.bfloat16,
                                    out_dtype=jnp.bfloat16))
    assert z_bf16.shape == (B, d4)
    assert z_bf16.dtype == jnp.bfloat16
    assert jnp.allclose(z_bf16.astype(jnp.float32), ref, atol=5e-2, rtol=5e-2)

    # 3) Forced small tile (bm=128 -> no h staging) with an even "parallel"
    #    step count (v7x megacore-style), multi-step pipelined grid.
    z_mb = jax.block_until_ready(
        discriminative_content_head(x, w1, b1, w2, b2, block_m=128,
                                    steps_multiple=2))
    assert z_mb.shape == (B, d4)
    assert jnp.allclose(z_mb, ref, atol=1e-5, rtol=1e-5)

    print("KERNEL_OK")
</pallas_src>

<mosaic_0001>
module attributes {stable_mosaic.version = 11 : i64} {
  func.func @_mlp_kernel_staged(%arg0: i32, %arg1: memref<256x32xf32, #tpu.memory_space<vmem>>, %arg2: memref<32x256xf32, #tpu.memory_space<vmem>>, %arg3: memref<1x256xf32, #tpu.memory_space<vmem>>, %arg4: memref<256x128xf32, #tpu.memory_space<vmem>>, %arg5: memref<1x128xf32, #tpu.memory_space<vmem>>, %arg6: memref<256x128xf32, #tpu.memory_space<vmem>>, %arg7: memref<256x256xf32, #tpu.memory_space<vmem>>) attributes {dimension_semantics = [#tpu.dimension_semantics<parallel>], iteration_bounds = array<i64: 1>, scalar_prefetch = 0 : i64, scratch_operands = 1 : i64, tpu.core_type = #tpu.core_type<tc>, window_params = [{transform_indices = @transform_0, window_bounds = array<i64: 256, 32>}, {pipeline_mode = #tpu.pipeline_mode<synchronous>, transform_indices = @transform_1, window_bounds = array<i64: 32, 256>}, {pipeline_mode = #tpu.pipeline_mode<synchronous>, transform_indices = @transform_2, window_bounds = array<i64: 1, 256>}, {pipeline_mode = #tpu.pipeline_mode<synchronous>, transform_indices = @transform_3, window_bounds = array<i64: 256, 128>}, {pipeline_mode = #tpu.pipeline_mode<synchronous>, transform_indices = @transform_4, window_bounds = array<i64: 1, 128>}, {transform_indices = @transform_5, window_bounds = array<i64: 256, 128>}]} {
    %c0 = arith.constant 0 : index
    %c0_0 = arith.constant 0 : index
    %0 = vector.load %arg1[%c0, %c0_0] : memref<256x32xf32, #tpu.memory_space<vmem>>, vector<256x32xf32>
    %c0_1 = arith.constant 0 : index
    %c0_2 = arith.constant 0 : index
    %1 = vector.load %arg2[%c0_1, %c0_2] : memref<32x256xf32, #tpu.memory_space<vmem>>, vector<32x256xf32>
    %cst = arith.constant dense<0.000000e+00> : vector<256x256xf32>
    %2 = tpu.matmul %0, %1, %cst {dimension_numbers = #tpu.dot_dimension_numbers<[1], [0], [0], [1], [0, 0, 1, 1], [], []>} : vector<256x32xf32>, vector<32x256xf32>, vector<256x256xf32> -> vector<256x256xf32>
    %c0_3 = arith.constant 0 : index
    %c0_4 = arith.constant 0 : index
    %3 = vector.load %arg3[%c0_3, %c0_4] : memref<1x256xf32, #tpu.memory_space<vmem>>, vector<1x256xf32>
    %4 = vector.broadcast %3 : vector<1x256xf32> to vector<256x256xf32>
    %5 = arith.addf %2, %4 : vector<256x256xf32>
    %cst_5 = arith.constant 0.000000e+00 : f32
    %6 = vector.broadcast %cst_5 : f32 to vector<256x256xf32>
    %7 = arith.maximumf %5, %6 : vector<256x256xf32>
    %c0_6 = arith.constant 0 : index
    %c0_7 = arith.constant 0 : index
    %8 = vector.load %arg7[%c0_6, %c0_7] : memref<256x256xf32, #tpu.memory_space<vmem>>, vector<256x256xf32>
    tpu.vector_store %arg7[%c0_6, %c0_7], %7 {strides = array<i32>} : memref<256x256xf32, #tpu.memory_space<vmem>>, vector<256x256xf32>,
    %c0_8 = arith.constant 0 : index
    %c0_9 = arith.constant 0 : index
    %9 = vector.load %arg7[%c0_8, %c0_9] : memref<256x256xf32, #tpu.memory_space<vmem>>, vector<256x256xf32>
    %c0_10 = arith.constant 0 : index
    %c0_11 = arith.constant 0 : index
    %10 = vector.load %arg4[%c0_10, %c0_11] : memref<256x128xf32, #tpu.memory_space<vmem>>, vector<256x128xf32>
    %cst_12 = arith.constant dense<0.000000e+00> : vector<256x128xf32>
    %11 = tpu.matmul %9, %10, %cst_12 {dimension_numbers = #tpu.dot_dimension_numbers<[1], [0], [0], [1], [0, 0, 1, 1], [], []>} : vector<256x256xf32>, vector<256x128xf32>, vector<256x128xf32> -> vector<256x128xf32>
    %c0_13 = arith.constant 0 : index
    %c0_14 = arith.constant 0 : index
    %12 = vector.load %arg5[%c0_13, %c0_14] : memref<1x128xf32, #tpu.memory_space<vmem>>, vector<1x128xf32>
    %13 = vector.broadcast %12 : vector<1x128xf32> to vector<256x128xf32>
    %14 = arith.addf %11, %13 : vector<256x128xf32>
    %c0_15 = arith.constant 0 : index
    %c0_16 = arith.constant 0 : index
    %15 = vector.load %arg6[%c0_15, %c0_16] : memref<256x128xf32, #tpu.memory_space<vmem>>, vector<256x128xf32>
    tpu.vector_store %arg6[%c0_15, %c0_16], %14 {strides = array<i32>} : memref<256x128xf32, #tpu.memory_space<vmem>>, vector<256x128xf32>,
    return
  }
  func.func @transform_0(%arg0: i32) -> (i32, i32) {
    %c0_i32 = arith.constant 0 : i32
    %c0_i32_0 = arith.constant 0 : i32
    return %arg0, %c0_i32 : i32, i32
  }
  func.func @transform_1(%arg0: i32) -> (i32, i32) {
    %c0_i32 = arith.constant 0 : i32
    %c0_i32_0 = arith.constant 0 : i32
    %c0_i32_1 = arith.constant 0 : i32
    return %c0_i32, %c0_i32_0 : i32, i32
  }
  func.func @transform_2(%arg0: i32) -> (i32, i32) {
    %c0_i32 = arith.constant 0 : i32
    %c0_i32_0 = arith.constant 0 : i32
    %c0_i32_1 = arith.constant 0 : i32
    return %c0_i32, %c0_i32_0 : i32, i32
  }
  func.func @transform_3(%arg0: i32) -> (i32, i32) {
    %c0_i32 = arith.constant 0 : i32
    %c0_i32_0 = arith.constant 0 : i32
    %c0_i32_1 = arith.constant 0 : i32
    return %c0_i32, %c0_i32_0 : i32, i32
  }
  func.func @transform_4(%arg0: i32) -> (i32, i32) {
    %c0_i32 = arith.constant 0 : i32
    %c0_i32_0 = arith.constant 0 : i32
    %c0_i32_1 = arith.constant 0 : i32
    return %c0_i32, %c0_i32_0 : i32, i32
  }
  func.func @transform_5(%arg0: i32) -> (i32, i32) {
    %c0_i32 = arith.constant 0 : i32
    %c0_i32_0 = arith.constant 0 : i32
    return %arg0, %c0_i32 : i32, i32
  }
}

</mosaic_0001>

<bundles_post_ra>
// kernel: tpu_custom_call.1
= control target key start
LH: loop header
LB: loop body
LE: loop exit
PB: predicated region body
PF: predicated region fallthrough
CT: control target
= control target key end

     0   :  { %s1450_s0 = inlined_call_operand.vmem [shape: f32[256,32], index: 0, kind: input, shape index: {}]   ;;  %s1451_s1 = inlined_call_operand.vmem [shape: f32[32,256], index: 1, kind: input, shape index: {}]   ;;  %s1452_s2 = inlined_call_operand.vmem [shape: f32[1,256], index: 2, kind: input, shape index: {}]   ;;  %s1453_s3 = inlined_call_operand.vmem [shape: f32[256,128], index: 3, kind: input, shape index: {}]   ;;  %s1454_s4 = inlined_call_operand.vmem [shape: f32[1,128], index: 4, kind: input, shape index: {}]   ;;  %s1455_s5 = inlined_call_operand.hbm [shape: f32[256,128], index: 5, kind: output, shape index: {}]  }
   0x1   :  { %v59_v0 = vld [vmem:[%s1451_s1 + $0x30] sm:$0xff]  ;;  %v60_v1 = vld [vmem:[%s1451_s1 + $0x38] sm:$0xff]  ;;  %v57_v2 = vld [vmem:[%s1451_s1 + $0x20] sm:$0xff] }
   0x2   :  { %176 = vmatpush.msra.mxu0 %v59_v0  ;;  %289 = vmatpush.msra.mxu1 %v60_v1  ;;  %v58_v3 = vld [vmem:[%s1451_s1 + $0x28] sm:$0xff]  ;;  %v55_v4 = vld [vmem:[%s1451_s1 + $0x10] sm:$0xff]  ;;  %v56_v5 = vld [vmem:[%s1451_s1 + $0x18] sm:$0xff] }
   0x3   :  { %v53_v6 = vld [vmem:[%s1451_s1] sm:$0xff]  ;;  %v54_v7 = vld [vmem:[%s1451_s1 + $0x8] sm:$0xff] }
   0x4   :  { %177 = vmatpush.msra.mxu0 %v57_v2  ;;  %290 = vmatpush.msra.mxu1 %v58_v3 }
   0x5   :  { %10 = vsyncpa [#allocation4], 0  ;;  %v21_v8 = vld [vmem:[%s1450_s0] sm:$0xff]  ;;  %vm67_vm0 = vcmask 261120   ;;  %v22_v9 = vld [vmem:[%s1450_s0 + $0x8] sm:$0xff]  ;;  %s882_s9 = sshll.u32 %s1455_s5, 4  ;;  %s883_s9 = int_to_ptr.hbm [resolvable:$true] %s882_s9 }
   0x6   :  { %178 = vmatpush.msra.mxu0 %v55_v4  ;;  %291 = vmatpush.msra.mxu1 %v56_v5  ;;  %v23_v10 = vld [vmem:[%s1450_s0 + $0x10] sm:$0xff]  ;;  %v24_v11 = vld [vmem:[%s1450_s0 + $0x18] sm:$0xff]  ;;  %v25_v12 = vld [vmem:[%s1450_s0 + $0x20] sm:$0xff]  ;;  %s1021_s10 = smov 128   ;;  %s1022_s11 = smov 8  }
   0x7   :  { %v26_v13 = vld [vmem:[%s1450_s0 + $0x28] sm:$0xff]  ;;  %v27_v14 = vld [vmem:[%s1450_s0 + $0x30] sm:$0xff]  ;;  %v28_v15 = vld [vmem:[%s1450_s0 + $0x38] sm:$0xff] }
   0x8   :  { %179 = vmatpush.msra.mxu0 %v53_v6  ;;  %292 = vmatpush.msra.mxu1 %v54_v7  ;;  %v29_v16 = vld [vmem:[%s1450_s0 + $0x40] sm:$0xff]  ;;  %v30_v17 = vld [vmem:[%s1450_s0 + $0x48] sm:$0xff]  ;;  %v597_v18 = vld [vmem:[%s1453_s3 + $0x78] sm:$0xff] }
   0x9   :  { %894 = vmatmul.msk.f32.vlgmr.msra.gmra.mxu0 %vm67_vm0, %v21_v8  ;;  %926 = vmatmul.msk.f32.vlgmr.msra.gmra.mxu1 %vm67_vm0, %v21_v8  ;;  %v596_v19 = vld [vmem:[%s1453_s3 + $0x70] sm:$0xff]  ;;  %v613_v20 = vld [vmem:[%s1453_s3 + $0xf8] sm:$0xff]  ;;  %v595_v22 = vld [vmem:[%s1453_s3 + $0x68] sm:$0xff] }
   0xa   :  { %958 = vmatpush.msra.mxu2 %v597_v18  ;;  %974 = vmatpush.msra.mxu3 %v613_v20  ;;  %v612_v21 = vld [vmem:[%s1453_s3 + $0xf0] sm:$0xff]  ;;  %v594_v24 = vld [vmem:[%s1453_s3 + $0x60] sm:$0xff]  ;;  %v611_v25 = vld [vmem:[%s1453_s3 + $0xe8] sm:$0xff] }
   0xb   :  { %618 = vmatpush.msrb.mxu0 %v597_v18  ;;  %731 = vmatpush.msrb.mxu1 %v613_v20  ;;  %v31_v23 = vld [vmem:[%s1450_s0 + $0x50] sm:$0xff]  ;;  %v593_v26 = vld [vmem:[%s1453_s3 + $0x58] sm:$0xff]  ;;  %v610_v27 = vld [vmem:[%s1453_s3 + $0xe0] sm:$0xff] }
   0xc   :  { %959 = vmatpush.msra.mxu2 %v596_v19  ;;  %975 = vmatpush.msra.mxu3 %v612_v21  ;;  %v592_v28 = vld [vmem:[%s1453_s3 + $0x50] sm:$0xff]  ;;  %v609_v29 = vld [vmem:[%s1453_s3 + $0xd8] sm:$0xff]  ;;  %v591_v30 = vld [vmem:[%s1453_s3 + $0x48] sm:$0xff] }
   0xd   :  { %619 = vmatpush.msrb.mxu0 %v596_v19  ;;  %732 = vmatpush.msrb.mxu1 %v612_v21  ;;  %v608_v31 = vld [vmem:[%s1453_s3 + $0xd0] sm:$0xff]  ;;  %v32_v32 = vld [vmem:[%s1450_s0 + $0x58] sm:$0xff]  ;;  %v590_v33 = vld [vmem:[%s1453_s3 + $0x40] sm:$0xff] }
   0xe   :  { %960 = vmatpush.msra.mxu2 %v595_v22  ;;  %976 = vmatpush.msra.mxu3 %v611_v25  ;;  %v607_v34 = vld [vmem:[%s1453_s3 + $0xc8] sm:$0xff]  ;;  %v589_v35 = vld [vmem:[%s1453_s3 + $0x38] sm:$0xff]  ;;  %v606_v36 = vld [vmem:[%s1453_s3 + $0xc0] sm:$0xff] }
   0xf   :  { %620 = vmatpush.msrb.mxu0 %v595_v22  ;;  %733 = vmatpush.msrb.mxu1 %v611_v25  ;;  %v588_v37 = vld [vmem:[%s1453_s3 + $0x30] sm:$0xff]  ;;  %v605_v38 = vld [vmem:[%s1453_s3 + $0xb8] sm:$0xff]  ;;  %v33_v39 = vld [vmem:[%s1450_s0 + $0x60] sm:$0xff] }
  0x10   :  { %961 = vmatpush.msra.mxu2 %v594_v24  ;;  %977 = vmatpush.msra.mxu3 %v610_v27  ;;  %v587_v40 = vld [vmem:[%s1453_s3 + $0x28] sm:$0xff]  ;;  %v604_v41 = vld [vmem:[%s1453_s3 + $0xb0] sm:$0xff]  ;;  %v586_v42 = vld [vmem:[%s1453_s3 + $0x20] sm:$0xff] }
  0x11   :  { %895 = vmatmul.msk.f32.gmra.mxu0 %vm67_vm0, %v22_v9  ;;  %927 = vmatmul.msk.f32.gmra.mxu1 %vm67_vm0, %v22_v9  ;;  %v603_v43 = vld [vmem:[%s1453_s3 + $0xa8] sm:$0xff]  ;;  %v585_v44 = vld [vmem:[%s1453_s3 + $0x18] sm:$0xff]  ;;  %v602_v45 = vld [vmem:[%s1453_s3 + $0xa0] sm:$0xff] }
  0x12   :  { %621 = vmatpush.msrb.mxu0 %v594_v24  ;;  %962 = vmatpush.msra.mxu2 %v593_v26  ;;  %v584_v46 = vld [vmem:[%s1453_s3 + $0x10] sm:$0xff]  ;;  %v601_v47 = vld [vmem:[%s1453_s3 + $0x98] sm:$0xff]  ;;  %v34_v48 = vld [vmem:[%s1450_s0 + $0x68] sm:$0xff] }
  0x13   :  { %734 = vmatpush.msrb.mxu1 %v610_v27  ;;  %978 = vmatpush.msra.mxu3 %v609_v29  ;;  %v583_v49 = vld [vmem:[%s1453_s3 + $0x8] sm:$0xff]  ;;  %v600_v50 = vld [vmem:[%s1453_s3 + $0x90] sm:$0xff]  ;;  %v582_v51 = vld [vmem:[%s1453_s3] sm:$0xff] }
  0x14   :  { %622 = vmatpush.msrb.mxu0 %v593_v26  ;;  %963 = vmatpush.msra.mxu2 %v592_v28  ;;  %v599_v52 = vld [vmem:[%s1453_s3 + $0x88] sm:$0xff]  ;;  %v598_v53 = vld [vmem:[%s1453_s3 + $0x80] sm:$0xff]  ;;  %v35_v54 = vld [vmem:[%s1450_s0 + $0x70] sm:$0xff] }
  0x15   :  { %735 = vmatpush.msrb.mxu1 %v609_v29  ;;  %979 = vmatpush.msra.mxu3 %v608_v31  ;;  %v36_v55 = vld [vmem:[%s1450_s0 + $0x78] sm:$0xff]  ;;  %v37_v58 = vld [vmem:[%s1450_s0 + $0x80] sm:$0xff]  ;;  %v38_v0 = vld [vmem:[%s1450_s0 + $0x88] sm:$0xff] }
  0x16   :  { %623 = vmatpush.msrb.mxu0 %v592_v28  ;;  %964 = vmatpush.msra.mxu2 %v591_v30  ;;  %v61_v59 = vld [vmem:[%s1452_s2] sm:$0x3]  ;;  %v39_v7 = vld [vmem:[%s1450_s0 + $0x90] sm:$0xff]  ;;  %v42_v28 = vld [vmem:[%s1450_s0 + $0xa8] sm:$0xff] }
  0x17   :  { %980 = vmatpush.msra.mxu3 %v607_v34  ;;  %736 = vmatpush.msrb.mxu1 %v608_v31  ;;  %v1265_v60 = vperm.slane %v61_v59, 0  ;;  %v1267_v61 = vperm.slane %v61_v59, 1  ;;  %v41_v21 = vld [vmem:[%s1450_s0 + $0xa0] sm:$0xff] }
  0x18   :  { %965 = vmatpush.msra.mxu2 %v590_v33  ;;  %624 = vmatpush.msrb.mxu0 %v591_v30 }
  0x19   :  { %896 = vmatmul.msk.f32.gmra.mxu0 %vm67_vm0, %v23_v10  ;;  %928 = vmatmul.msk.f32.gmra.mxu1 %vm67_vm0, %v23_v10 }
  0x1a   :  { %966 = vmatpush.msra.mxu2 %v589_v35  ;;  %981 = vmatpush.msra.mxu3 %v606_v36 }
  0x1b   :  { %737 = vmatpush.msrb.mxu1 %v607_v34  ;;  %625 = vmatpush.msrb.mxu0 %v590_v33 }
  0x1c   :  { %967 = vmatpush.msra.mxu2 %v588_v37  ;;  %982 = vmatpush.msra.mxu3 %v605_v38 }
  0x1d   :  { %738 = vmatpush.msrb.mxu1 %v606_v36  ;;  %626 = vmatpush.msrb.mxu0 %v589_v35  ;;  %v43_v35 = vld [vmem:[%s1450_s0 + $0xb0] sm:$0xff] }
  0x1e   :  { %968 = vmatpush.msra.mxu2 %v587_v40  ;;  %983 = vmatpush.msra.mxu3 %v604_v41 }
  0x1f   :  { %739 = vmatpush.msrb.mxu1 %v605_v38  ;;  %627 = vmatpush.msrb.mxu0 %v588_v37 }
  0x20   :  { %969 = vmatpush.msra.mxu2 %v586_v42  ;;  %984 = vmatpush.msra.mxu3 %v603_v43 }
  0x21   :  { %897 = vmatmul.msk.f32.gmra.mxu0 %vm67_vm0, %v24_v11  ;;  %929 = vmatmul.msk.f32.gmra.mxu1 %vm67_vm0, %v24_v11 }
  0x22   :  { %970 = vmatpush.msra.mxu2 %v585_v44  ;;  %985 = vmatpush.msra.mxu3 %v602_v45 }
  0x23   :  { %740 = vmatpush.msrb.mxu1 %v604_v41  ;;  %628 = vmatpush.msrb.mxu0 %v587_v40 }
  0x24   :  { %971 = vmatpush.msra.mxu2 %v584_v46  ;;  %986 = vmatpush.msra.mxu3 %v601_v47 }
  0x25   :  { %741 = vmatpush.msrb.mxu1 %v603_v43  ;;  %629 = vmatpush.msrb.mxu0 %v586_v42  ;;  %v44_v42 = vld [vmem:[%s1450_s0 + $0xb8] sm:$0xff] }
  0x26   :  { %972 = vmatpush.msra.mxu2 %v583_v49  ;;  %987 = vmatpush.msra.mxu3 %v600_v50 }
  0x27   :  { %742 = vmatpush.msrb.mxu1 %v602_v45  ;;  %630 = vmatpush.msrb.mxu0 %v585_v44 }
  0x28   :  { %973 = vmatpush.msra.mxu2 %v582_v51  ;;  %988 = vmatpush.msra.mxu3 %v599_v52 }
  0x29   :  { %898 = vmatmul.msk.f32.gmra.mxu0 %vm67_vm0, %v25_v12  ;;  %930 = vmatmul.msk.f32.gmra.mxu1 %vm67_vm0, %v25_v12 }
  0x2a   :  { %989 = vmatpush.msra.mxu3 %v598_v53  ;;  %743 = vmatpush.msrb.mxu1 %v601_v47 }
  0x2b   :  { %631 = vmatpush.msrb.mxu0 %v584_v46 }
  0x2c   :  { %744 = vmatpush.msrb.mxu1 %v600_v50 }
  0x2d   :  { %632 = vmatpush.msrb.mxu0 %v583_v49  ;;  %v45_v49 = vld [vmem:[%s1450_s0 + $0xc0] sm:$0xff] }
  0x2e   :  { %745 = vmatpush.msrb.mxu1 %v599_v52 }
  0x2f   :  { %633 = vmatpush.msrb.mxu0 %v582_v51 }
  0x30   :  { %746 = vmatpush.msrb.mxu1 %v598_v53 }
  0x31   :  { %899 = vmatmul.msk.f32.gmra.mxu0 %vm67_vm0, %v26_v13  ;;  %931 = vmatmul.msk.f32.gmra.mxu1 %vm67_vm0, %v26_v13 }
  0x39   :  { %900 = vmatmul.msk.f32.gmra.mxu0 %vm67_vm0, %v27_v14  ;;  %932 = vmatmul.msk.f32.gmra.mxu1 %vm67_vm0, %v27_v14  ;;  %v40_v14 = vld [vmem:[%s1450_s0 + $0x98] sm:$0xff] }
  0x41   :  { %901 = vmatmul.msk.f32.gmra.mxu0 %vm67_vm0, %v28_v15  ;;  %933 = vmatmul.msk.f32.gmra.mxu1 %vm67_vm0, %v28_v15 }
  0x49   :  { %902 = vmatmul.msk.f32.gmra.mxu0 %vm67_vm0, %v29_v16  ;;  %934 = vmatmul.msk.f32.gmra.mxu1 %vm67_vm0, %v29_v16 }
  0x51   :  { %903 = vmatmul.msk.f32.gmra.mxu0 %vm67_vm0, %v30_v17  ;;  %935 = vmatmul.msk.f32.gmra.mxu1 %vm67_vm0, %v30_v17 }
  0x59   :  { %904 = vmatmul.msk.f32.gmra.mxu0 %vm67_vm0, %v31_v23  ;;  %936 = vmatmul.msk.f32.gmra.mxu1 %vm67_vm0, %v31_v23 }
  0x61   :  { %905 = vmatmul.msk.f32.gmra.mxu0 %vm67_vm0, %v32_v32  ;;  %937 = vmatmul.msk.f32.gmra.mxu1 %vm67_vm0, %v32_v32 }
  0x69   :  { %906 = vmatmul.msk.f32.gmra.mxu0 %vm67_vm0, %v33_v39  ;;  %938 = vmatmul.msk.f32.gmra.mxu1 %vm67_vm0, %v33_v39 }
  0x71   :  { %907 = vmatmul.msk.f32.gmra.mxu0 %vm67_vm0, %v34_v48  ;;  %939 = vmatmul.msk.f32.gmra.mxu1 %vm67_vm0, %v34_v48 }
  0x79   :  { %908 = vmatmul.msk.f32.gmra.mxu0 %vm67_vm0, %v35_v54  ;;  %940 = vmatmul.msk.f32.gmra.mxu1 %vm67_vm0, %v35_v54 }
  0x81   :  { %909 = vmatmul.msk.f32.gmra.mxu0 %vm67_vm0, %v36_v55  ;;  %941 = vmatmul.msk.f32.gmra.mxu1 %vm67_vm0, %v36_v55 }
  0x86   :  { %v1253_v56 = vpop.f32.mrf.mxu0  ;;  %v1255_v57 = vpop.f32.mrf.mxu1 }
  0x89   :  { %910 = vmatmul.msk.f32.gmra.mxu0 %vm67_vm0, %v37_v58  ;;  %942 = vmatmul.msk.f32.gmra.mxu1 %vm67_vm0, %v37_v58  ;;  %v46_v58 = vld [vmem:[%s1450_s0 + $0xc8] sm:$0xff] }
  0x8e   :  { %v184_v62 = vpop.f32.mrf.mxu0  ;;  %v297_v63 = vpop.f32.mrf.mxu1 }
  0x8f   :  { %v185_v1 = vadd.f32 %v184_v62, %v1265_v60  ;;  %v298_v2 = vadd.f32 %v297_v63, %v1267_v61 }
  0x91   :  { %911 = vmatmul.msk.f32.gmra.mxu0 %vm67_vm0, %v38_v0  ;;  %943 = vmatmul.msk.f32.gmra.mxu1 %vm67_vm0, %v38_v0  ;;  %v392_v3 = vmax.f32 %v185_v1, 0.0  ;;  %v393_v4 = vmax.f32 %v298_v2, 0.0 }
  0x93   :  { %637 = vmatmul.f32.vlgmr.msra.gmra.mxu2 %v392_v3  ;;  %750 = vmatmul.f32.vlgmr.msra.gmra.mxu3 %v393_v4  ;;  %v47_v3 = vld [vmem:[%s1450_s0 + $0xd0] sm:$0xff] }
  0x96   :  { %v187_v5 = vpop.f32.mrf.mxu0  ;;  %v300_v6 = vpop.f32.mrf.mxu1 }
  0x97   :  { %v188_v8 = vadd.f32 %v187_v5, %v1265_v60  ;;  %v301_v9 = vadd.f32 %v300_v6, %v1267_v61 }
  0x99   :  { %912 = vmatmul.msk.f32.gmra.mxu0 %vm67_vm0, %v39_v7  ;;  %944 = vmatmul.msk.f32.gmra.mxu1 %vm67_vm0, %v39_v7  ;;  %v394_v10 = vmax.f32 %v188_v8, 0.0  ;;  %v395_v11 = vmax.f32 %v301_v9, 0.0 }
  0x9b   :  { %640 = vmatmul.f32.gmra.mxu2 %v394_v10  ;;  %753 = vmatmul.f32.gmra.mxu3 %v395_v11  ;;  %v48_v10 = vld [vmem:[%s1450_s0 + $0xd8] sm:$0xff] }
  0x9e   :  { %v190_v12 = vpop.f32.mrf.mxu0  ;;  %v303_v13 = vpop.f32.mrf.mxu1 }
  0x9f   :  { %v191_v15 = vadd.f32 %v190_v12, %v1265_v60  ;;  %v304_v16 = vadd.f32 %v303_v13, %v1267_v61 }
  0xa1   :  { %913 = vmatmul.msk.f32.gmra.mxu0 %vm67_vm0, %v40_v14  ;;  %945 = vmatmul.msk.f32.gmra.mxu1 %vm67_vm0, %v40_v14  ;;  %v396_v17 = vmax.f32 %v191_v15, 0.0  ;;  %v397_v18 = vmax.f32 %v304_v16, 0.0 }
  0xa3   :  { %643 = vmatmul.f32.gmra.mxu2 %v396_v17  ;;  %756 = vmatmul.f32.gmra.mxu3 %v397_v18  ;;  %v49_v17 = vld [vmem:[%s1450_s0 + $0xe0] sm:$0xff] }
  0xa6   :  { %v193_v19 = vpop.f32.mrf.mxu0  ;;  %v306_v20 = vpop.f32.mrf.mxu1 }
  0xa7   :  { %v194_v22 = vadd.f32 %v193_v19, %v1265_v60  ;;  %v307_v23 = vadd.f32 %v306_v20, %v1267_v61 }
  0xa9   :  { %914 = vmatmul.msk.f32.gmra.mxu0 %vm67_vm0, %v41_v21  ;;  %946 = vmatmul.msk.f32.gmra.mxu1 %vm67_vm0, %v41_v21  ;;  %v398_v24 = vmax.f32 %v194_v22, 0.0  ;;  %v399_v25 = vmax.f32 %v307_v23, 0.0 }
  0xab   :  { %646 = vmatmul.f32.gmra.mxu2 %v398_v24  ;;  %759 = vmatmul.f32.gmra.mxu3 %v399_v25  ;;  %v50_v24 = vld [vmem:[%s1450_s0 + $0xe8] sm:$0xff] }
  0xae   :  { %v196_v26 = vpop.f32.mrf.mxu0  ;;  %v309_v27 = vpop.f32.mrf.mxu1 }
  0xaf   :  { %v197_v29 = vadd.f32 %v196_v26, %v1265_v60  ;;  %v310_v30 = vadd.f32 %v309_v27, %v1267_v61 }
  0xb1   :  { %915 = vmatmul.msk.f32.gmra.mxu0 %vm67_vm0, %v42_v28  ;;  %947 = vmatmul.msk.f32.gmra.mxu1 %vm67_vm0, %v42_v28  ;;  %v400_v31 = vmax.f32 %v197_v29, 0.0  ;;  %v401_v32 = vmax.f32 %v310_v30, 0.0 }
  0xb3   :  { %649 = vmatmul.f32.gmra.mxu2 %v400_v31  ;;  %762 = vmatmul.f32.gmra.mxu3 %v401_v32  ;;  %v51_v31 = vld [vmem:[%s1450_s0 + $0xf0] sm:$0xff] }
  0xb6   :  { %v199_v33 = vpop.f32.mrf.mxu0  ;;  %v312_v34 = vpop.f32.mrf.mxu1 }
  0xb7   :  { %v200_v36 = vadd.f32 %v199_v33, %v1265_v60  ;;  %v313_v37 = vadd.f32 %v312_v34, %v1267_v61 }
  0xb9   :  { %916 = vmatmul.msk.f32.gmra.mxu0 %vm67_vm0, %v43_v35  ;;  %948 = vmatmul.msk.f32.gmra.mxu1 %vm67_vm0, %v43_v35  ;;  %v402_v38 = vmax.f32 %v200_v36, 0.0  ;;  %v403_v39 = vmax.f32 %v313_v37, 0.0 }
  0xbb   :  { %652 = vmatmul.f32.gmra.mxu2 %v402_v38  ;;  %765 = vmatmul.f32.gmra.mxu3 %v403_v39  ;;  %v52_v38 = vld [vmem:[%s1450_s0 + $0xf8] sm:$0xff] }
  0xbe   :  { %v202_v40 = vpop.f32.mrf.mxu0  ;;  %v315_v41 = vpop.f32.mrf.mxu1 }
  0xbf   :  { %v203_v43 = vadd.f32 %v202_v40, %v1265_v60  ;;  %v316_v44 = vadd.f32 %v315_v41, %v1267_v61 }
  0xc1   :  { %917 = vmatmul.msk.f32.gmra.mxu0 %vm67_vm0, %v44_v42  ;;  %949 = vmatmul.msk.f32.gmra.mxu1 %vm67_vm0, %v44_v42  ;;  %v404_v45 = vmax.f32 %v203_v43, 0.0  ;;  %v405_v46 = vmax.f32 %v316_v44, 0.0  ;;  %v182_v43 = vadd.f32 %v1253_v56, %v1265_v60  ;;  %v295_v44 = vadd.f32 %v1255_v57, %v1267_v61 }
  0xc3   :  { %655 = vmatmul.f32.gmra.mxu2 %v404_v45  ;;  %768 = vmatmul.f32.gmra.mxu3 %v405_v46 }
  0xc6   :  { %v205_v47 = vpop.f32.mrf.mxu0  ;;  %v318_v48 = vpop.f32.mrf.mxu1 }
  0xc7   :  { %v206_v50 = vadd.f32 %v205_v47, %v1265_v60  ;;  %v319_v51 = vadd.f32 %v318_v48, %v1267_v61  ;;  %v390_v47 = vmax.f32 %v182_v43, 0.0  ;;  %v391_v48 = vmax.f32 %v295_v44, 0.0 }
  0xc9   :  { %918 = vmatmul.msk.f32.gmra.mxu0 %vm67_vm0, %v45_v49  ;;  %950 = vmatmul.msk.f32.gmra.mxu1 %vm67_vm0, %v45_v49  ;;  %v406_v52 = vmax.f32 %v206_v50, 0.0  ;;  %v407_v53 = vmax.f32 %v319_v51, 0.0 }
  0xcb   :  { %658 = vmatmul.f32.gmra.mxu2 %v406_v52  ;;  %771 = vmatmul.f32.gmra.mxu3 %v407_v53 }
  0xce   :  { %v208_v54 = vpop.f32.mrf.mxu0  ;;  %v321_v55 = vpop.f32.mrf.mxu1 }
  0xcf   :  { %v209_v59 = vadd.f32 %v208_v54, %v1265_v60  ;;  %v322_v62 = vadd.f32 %v321_v55, %v1267_v61 }
  0xd1   :  { %v408_v63 = vmax.f32 %v209_v59, 0.0  ;;  %v409_v0 = vmax.f32 %v322_v62, 0.0  ;;  %919 = vmatmul.msk.f32.gmra.mxu0 %vm67_vm0, %v46_v58  ;;  %951 = vmatmul.msk.f32.gmra.mxu1 %vm67_vm0, %v46_v58  ;;  %v1385_v59 = vld [vmem:[%s1454_s4] ss:$0 sm:$0xff]  ;;  %s1020_s4 = smov [#allocation3]  }
  0xd2   :  { %s880_s6 = sshll.u32 %s1020_s4, 4  ;;  %s881_s6 = int_to_ptr.vmem [resolvable:$true] %s880_s6 }
  0xd3   :  { %661 = vmatmul.f32.gmra.mxu2 %v408_v63  ;;  %774 = vmatmul.f32.gmra.mxu3 %v409_v0 }
  0xd6   :  { %v211_v1 = vpop.f32.mrf.mxu0  ;;  %v324_v2 = vpop.f32.mrf.mxu1 }
  0xd7   :  { %v212_v4 = vadd.f32 %v211_v1, %v1265_v60  ;;  %v325_v5 = vadd.f32 %v324_v2, %v1267_v61 }
  0xd9   :  { %v410_v6 = vmax.f32 %v212_v4, 0.0  ;;  %v411_v7 = vmax.f32 %v325_v5, 0.0  ;;  %920 = vmatmul.msk.f32.gmra.mxu0 %vm67_vm0, %v47_v3  ;;  %952 = vmatmul.msk.f32.gmra.mxu1 %vm67_vm0, %v47_v3 }
  0xdb   :  { %664 = vmatmul.f32.gmra.mxu2 %v410_v6  ;;  %777 = vmatmul.f32.gmra.mxu3 %v411_v7 }
  0xde   :  { %v214_v8 = vpop.f32.mrf.mxu0  ;;  %v327_v9 = vpop.f32.mrf.mxu1 }
  0xdf   :  { %v215_v11 = vadd.f32 %v214_v8, %v1265_v60  ;;  %v328_v12 = vadd.f32 %v327_v9, %v1267_v61 }
  0xe1   :  { %v412_v13 = vmax.f32 %v215_v11, 0.0  ;;  %v413_v14 = vmax.f32 %v328_v12, 0.0  ;;  %921 = vmatmul.msk.f32.gmra.mxu0 %vm67_vm0, %v48_v10  ;;  %953 = vmatmul.msk.f32.gmra.mxu1 %vm67_vm0, %v48_v10 }
  0xe3   :  { %667 = vmatmul.f32.gmra.mxu2 %v412_v13  ;;  %780 = vmatmul.f32.gmra.mxu3 %v413_v14 }
  0xe6   :  { %v217_v15 = vpop.f32.mrf.mxu0  ;;  %v330_v16 = vpop.f32.mrf.mxu1 }
  0xe7   :  { %v218_v18 = vadd.f32 %v217_v15, %v1265_v60  ;;  %v331_v19 = vadd.f32 %v330_v16, %v1267_v61 }
  0xe9   :  { %v414_v20 = vmax.f32 %v218_v18, 0.0  ;;  %v415_v21 = vmax.f32 %v331_v19, 0.0  ;;  %922 = vmatmul.msk.f32.gmra.mxu0 %vm67_vm0, %v49_v17  ;;  %954 = vmatmul.msk.f32.gmra.mxu1 %vm67_vm0, %v49_v17 }
  0xeb   :  { %670 = vmatmul.f32.gmra.mxu2 %v414_v20  ;;  %783 = vmatmul.f32.gmra.mxu3 %v415_v21 }
  0xee   :  { %v220_v22 = vpop.f32.mrf.mxu0  ;;  %v333_v23 = vpop.f32.mrf.mxu1 }
  0xef   :  { %v221_v25 = vadd.f32 %v220_v22, %v1265_v60  ;;  %v334_v26 = vadd.f32 %v333_v23, %v1267_v61 }
  0xf1   :  { %v416_v27 = vmax.f32 %v221_v25, 0.0  ;;  %v417_v28 = vmax.f32 %v334_v26, 0.0  ;;  %923 = vmatmul.msk.f32.gmra.mxu0 %vm67_vm0, %v50_v24  ;;  %955 = vmatmul.msk.f32.gmra.mxu1 %vm67_vm0, %v50_v24 }
  0xf3   :  { %673 = vmatmul.f32.gmra.mxu2 %v416_v27  ;;  %786 = vmatmul.f32.gmra.mxu3 %v417_v28 }
  0xf6   :  { %v223_v29 = vpop.f32.mrf.mxu0  ;;  %v336_v30 = vpop.f32.mrf.mxu1 }
  0xf7   :  { %v224_v32 = vadd.f32 %v223_v29, %v1265_v60  ;;  %v337_v33 = vadd.f32 %v336_v30, %v1267_v61 }
  0xf9   :  { %v418_v34 = vmax.f32 %v224_v32, 0.0  ;;  %v419_v35 = vmax.f32 %v337_v33, 0.0  ;;  %924 = vmatmul.msk.f32.gmra.mxu0 %vm67_vm0, %v51_v31  ;;  %956 = vmatmul.msk.f32.gmra.mxu1 %vm67_vm0, %v51_v31 }
  0xfb   :  { %676 = vmatmul.f32.gmra.mxu2 %v418_v34  ;;  %789 = vmatmul.f32.gmra.mxu3 %v419_v35 }
  0xfe   :  { %v226_v36 = vpop.f32.mrf.mxu0  ;;  %v339_v37 = vpop.f32.mrf.mxu1 }
  0xff   :  { %v227_v39 = vadd.f32 %v226_v36, %v1265_v60  ;;  %v340_v40 = vadd.f32 %v339_v37, %v1267_v61 }
 0x101   :  { %v420_v41 = vmax.f32 %v227_v39, 0.0  ;;  %v421_v42 = vmax.f32 %v340_v40, 0.0  ;;  %925 = vmatmul.msk.f32.gmra.mxu0 %vm67_vm0, %v52_v38  ;;  %957 = vmatmul.msk.f32.gmra.mxu1 %vm67_vm0, %v52_v38 }
 0x103   :  { %679 = vmatmul.f32.gmra.mxu2 %v420_v41  ;;  %792 = vmatmul.f32.gmra.mxu3 %v421_v42 }
 0x106   :  { %v229_v45 = vpop.f32.mrf.mxu0  ;;  %v342_v46 = vpop.f32.mrf.mxu1 }
 0x107   :  { %v230_v49 = vadd.f32 %v229_v45, %v1265_v60  ;;  %v343_v50 = vadd.f32 %v342_v46, %v1267_v61 }
 0x109   :  { %v422_v51 = vmax.f32 %v230_v49, 0.0  ;;  %v423_v52 = vmax.f32 %v343_v50, 0.0  ;;  %634 = vmatmul.f32.vlgmr.msrb.gmra.mxu0 %v390_v47  ;;  %747 = vmatmul.f32.vlgmr.msrb.gmra.mxu1 %v391_v48 }
 0x10b   :  { %682 = vmatmul.f32.gmra.mxu2 %v422_v51  ;;  %795 = vmatmul.f32.gmra.mxu3 %v423_v52 }
 0x10e   :  { %v232_v56 = vpop.f32.mrf.mxu0  ;;  %v345_v53 = vpop.f32.mrf.mxu1 }
 0x10f   :  { %v233_v57 = vadd.f32 %v232_v56, %v1265_v60  ;;  %v346_v54 = vadd.f32 %v345_v53, %v1267_v61 }
 0x111   :  { %v424_v55 = vmax.f32 %v233_v57, 0.0  ;;  %v425_v58 = vmax.f32 %v346_v54, 0.0 }
 0x113   :  { %685 = vmatmul.f32.gmra.mxu2 %v424_v55  ;;  %798 = vmatmul.f32.gmra.mxu3 %v425_v58 }
 0x116   :  { %v235_v62 = vpop.f32.mrf.mxu0  ;;  %v348_v63 = vpop.f32.mrf.mxu1 }
 0x117   :  { %v236_v0 = vadd.f32 %v235_v62, %v1265_v60  ;;  %v349_v1 = vadd.f32 %v348_v63, %v1267_v61  ;;  %v638_v2 = vpop.f32.mrf.mxu2  ;;  %v751_v3 = vpop.f32.mrf.mxu3 }
 0x118   :  { %v639_v4 = vadd.f32 %v1385_v59, %v638_v2 }
 0x119   :  { %v426_v5 = vmax.f32 %v236_v0, 0.0  ;;  %v427_v6 = vmax.f32 %v349_v1, 0.0 }
 0x11a   :  { %v752_v7 = vadd.f32 %v751_v3, %v639_v4 }
 0x11b   :  { %688 = vmatmul.f32.gmra.mxu2 %v426_v5  ;;  %801 = vmatmul.f32.gmra.mxu3 %v427_v6 }
 0x11c   :  { %845 = vst [vmem:[#allocation3 + $0x8] sm:$0xff] %v752_v7 }
 0x11e   :  { %v238_v8 = vpop.f32.mrf.mxu0  ;;  %v351_v9 = vpop.f32.mrf.mxu1 }
 0x11f   :  { %v239_v10 = vadd.f32 %v238_v8, %v1265_v60  ;;  %v352_v11 = vadd.f32 %v351_v9, %v1267_v61  ;;  %v641_v12 = vpop.f32.mrf.mxu2  ;;  %v754_v13 = vpop.f32.mrf.mxu3 }
 0x120   :  { %v642_v14 = vadd.f32 %v1385_v59, %v641_v12 }
 0x121   :  { %v428_v15 = vmax.f32 %v239_v10, 0.0  ;;  %v429_v16 = vmax.f32 %v352_v11, 0.0 }
 0x122   :  { %v755_v17 = vadd.f32 %v754_v13, %v642_v14 }
 0x123   :  { %691 = vmatmul.f32.gmra.mxu2 %v428_v15  ;;  %804 = vmatmul.f32.gmra.mxu3 %v429_v16 }
 0x124   :  { %846 = vst [vmem:[#allocation3 + $0x10] sm:$0xff] %v755_v17 }
 0x126   :  { %v241_v18 = vpop.f32.mrf.mxu0  ;;  %v354_v19 = vpop.f32.mrf.mxu1 }
 0x127   :  { %v242_v20 = vadd.f32 %v241_v18, %v1265_v60  ;;  %v355_v21 = vadd.f32 %v354_v19, %v1267_v61  ;;  %v644_v22 = vpop.f32.mrf.mxu2  ;;  %v757_v23 = vpop.f32.mrf.mxu3 }
 0x128   :  { %v645_v24 = vadd.f32 %v1385_v59, %v644_v22 }
 0x129   :  { %v430_v25 = vmax.f32 %v242_v20, 0.0  ;;  %v431_v26 = vmax.f32 %v355_v21, 0.0 }
 0x12a   :  { %v758_v27 = vadd.f32 %v757_v23, %v645_v24 }
 0x12b   :  { %694 = vmatmul.f32.gmra.mxu2 %v430_v25  ;;  %807 = vmatmul.f32.gmra.mxu3 %v431_v26 }
 0x12c   :  { %847 = vst [vmem:[#allocation3 + $0x18] sm:$0xff] %v758_v27 }
 0x12e   :  { %v244_v28 = vpop.f32.mrf.mxu0  ;;  %v357_v29 = vpop.f32.mrf.mxu1 }
 0x12f   :  { %v245_v30 = vadd.f32 %v244_v28, %v1265_v60  ;;  %v358_v31 = vadd.f32 %v357_v29, %v1267_v61  ;;  %v647_v32 = vpop.f32.mrf.mxu2  ;;  %v760_v33 = vpop.f32.mrf.mxu3 }
 0x130   :  { %v648_v34 = vadd.f32 %v1385_v59, %v647_v32 }
 0x131   :  { %v432_v35 = vmax.f32 %v245_v30, 0.0  ;;  %v433_v36 = vmax.f32 %v358_v31, 0.0 }
 0x132   :  { %v761_v37 = vadd.f32 %v760_v33, %v648_v34 }
 0x133   :  { %697 = vmatmul.f32.gmra.mxu2 %v432_v35  ;;  %810 = vmatmul.f32.gmra.mxu3 %v433_v36 }
 0x134   :  { %848 = vst [vmem:[#allocation3 + $0x20] sm:$0xff] %v761_v37 }
 0x136   :  { %v247_v38 = vpop.f32.mrf.mxu0  ;;  %v360_v39 = vpop.f32.mrf.mxu1 }
 0x137   :  { %v248_v40 = vadd.f32 %v247_v38, %v1265_v60  ;;  %v361_v41 = vadd.f32 %v360_v39, %v1267_v61  ;;  %v650_v42 = vpop.f32.mrf.mxu2  ;;  %v763_v43 = vpop.f32.mrf.mxu3 }
 0x138   :  { %v651_v44 = vadd.f32 %v1385_v59, %v650_v42 }
 0x139   :  { %v434_v45 = vmax.f32 %v248_v40, 0.0  ;;  %v435_v46 = vmax.f32 %v361_v41, 0.0 }
 0x13a   :  { %v764_v47 = vadd.f32 %v763_v43, %v651_v44 }
 0x13b   :  { %700 = vmatmul.f32.gmra.mxu2 %v434_v45  ;;  %813 = vmatmul.f32.gmra.mxu3 %v435_v46 }
 0x13c   :  { %849 = vst [vmem:[#allocation3 + $0x28] sm:$0xff] %v764_v47 }
 0x13e   :  { %v250_v48 = vpop.f32.mrf.mxu0  ;;  %v363_v49 = vpop.f32.mrf.mxu1 }
 0x13f   :  { %v251_v50 = vadd.f32 %v250_v48, %v1265_v60  ;;  %v364_v51 = vadd.f32 %v363_v49, %v1267_v61  ;;  %v653_v52 = vpop.f32.mrf.mxu2  ;;  %v766_v56 = vpop.f32.mrf.mxu3 }
 0x140   :  { %v654_v53 = vadd.f32 %v1385_v59, %v653_v52 }
 0x141   :  { %v436_v57 = vmax.f32 %v251_v50, 0.0  ;;  %v437_v54 = vmax.f32 %v364_v51, 0.0 }
 0x142   :  { %v767_v55 = vadd.f32 %v766_v56, %v654_v53 }
 0x143   :  { %703 = vmatmul.f32.gmra.mxu2 %v436_v57  ;;  %816 = vmatmul.f32.gmra.mxu3 %v437_v54 }
 0x144   :  { %850 = vst [vmem:[#allocation3 + $0x30] sm:$0xff] %v767_v55 }
 0x146   :  { %v253_v58 = vpop.f32.mrf.mxu0  ;;  %v366_v62 = vpop.f32.mrf.mxu1 }
 0x147   :  { %v254_v63 = vadd.f32 %v253_v58, %v1265_v60  ;;  %v367_v0 = vadd.f32 %v366_v62, %v1267_v61  ;;  %v656_v1 = vpop.f32.mrf.mxu2  ;;  %v769_v2 = vpop.f32.mrf.mxu3 }
 0x148   :  { %v657_v3 = vadd.f32 %v1385_v59, %v656_v1 }
 0x149   :  { %v438_v4 = vmax.f32 %v254_v63, 0.0  ;;  %v439_v5 = vmax.f32 %v367_v0, 0.0 }
 0x14a   :  { %v770_v6 = vadd.f32 %v769_v2, %v657_v3 }
 0x14b   :  { %706 = vmatmul.f32.gmra.mxu2 %v438_v4  ;;  %819 = vmatmul.f32.gmra.mxu3 %v439_v5 }
 0x14c   :  { %851 = vst [vmem:[#allocation3 + $0x38] sm:$0xff] %v770_v6 }
 0x14e   :  { %v256_v7 = vpop.f32.mrf.mxu0  ;;  %v369_v8 = vpop.f32.mrf.mxu1 }
 0x14f   :  { %v257_v9 = vadd.f32 %v256_v7, %v1265_v60  ;;  %v370_v10 = vadd.f32 %v369_v8, %v1267_v61  ;;  %v659_v11 = vpop.f32.mrf.mxu2  ;;  %v772_v12 = vpop.f32.mrf.mxu3 }
 0x150   :  { %v660_v13 = vadd.f32 %v1385_v59, %v659_v11 }
 0x151   :  { %v440_v14 = vmax.f32 %v257_v9, 0.0  ;;  %v441_v15 = vmax.f32 %v370_v10, 0.0 }
 0x152   :  { %v773_v16 = vadd.f32 %v772_v12, %v660_v13 }
 0x153   :  { %709 = vmatmul.f32.gmra.mxu2 %v440_v14  ;;  %822 = vmatmul.f32.gmra.mxu3 %v441_v15 }
 0x154   :  { %852 = vst [vmem:[#allocation3 + $0x40] sm:$0xff] %v773_v16 }
 0x156   :  { %v259_v17 = vpop.f32.mrf.mxu0  ;;  %v372_v18 = vpop.f32.mrf.mxu1 }
 0x157   :  { %v260_v19 = vadd.f32 %v259_v17, %v1265_v60  ;;  %v373_v20 = vadd.f32 %v372_v18, %v1267_v61  ;;  %v662_v21 = vpop.f32.mrf.mxu2  ;;  %v775_v22 = vpop.f32.mrf.mxu3 }
 0x158   :  { %v663_v23 = vadd.f32 %v1385_v59, %v662_v21 }
 0x159   :  { %v442_v24 = vmax.f32 %v260_v19, 0.0  ;;  %v443_v25 = vmax.f32 %v373_v20, 0.0 }
 0x15a   :  { %v776_v26 = vadd.f32 %v775_v22, %v663_v23 }
 0x15b   :  { %712 = vmatmul.f32.gmra.mxu2 %v442_v24  ;;  %825 = vmatmul.f32.gmra.mxu3 %v443_v25 }
 0x15c   :  { %853 = vst [vmem:[#allocation3 + $0x48] sm:$0xff] %v776_v26 }
 0x15e   :  { %v262_v27 = vpop.f32.mrf.mxu0  ;;  %v375_v28 = vpop.f32.mrf.mxu1 }
 0x15f   :  { %v263_v29 = vadd.f32 %v262_v27, %v1265_v60  ;;  %v376_v30 = vadd.f32 %v375_v28, %v1267_v61  ;;  %v665_v31 = vpop.f32.mrf.mxu2  ;;  %v778_v32 = vpop.f32.mrf.mxu3 }
 0x160   :  { %v666_v33 = vadd.f32 %v1385_v59, %v665_v31 }
 0x161   :  { %v444_v34 = vmax.f32 %v263_v29, 0.0  ;;  %v445_v35 = vmax.f32 %v376_v30, 0.0 }
 0x162   :  { %v779_v36 = vadd.f32 %v778_v32, %v666_v33 }
 0x163   :  { %715 = vmatmul.f32.gmra.mxu2 %v444_v34  ;;  %828 = vmatmul.f32.gmra.mxu3 %v445_v35 }
 0x164   :  { %854 = vst [vmem:[#allocation3 + $0x50] sm:$0xff] %v779_v36 }
 0x166   :  { %v265_v37 = vpop.f32.mrf.mxu0  ;;  %v378_v38 = vpop.f32.mrf.mxu1 }
 0x167   :  { %v266_v39 = vadd.f32 %v265_v37, %v1265_v60  ;;  %v379_v40 = vadd.f32 %v378_v38, %v1267_v61  ;;  %v668_v41 = vpop.f32.mrf.mxu2  ;;  %v781_v42 = vpop.f32.mrf.mxu3 }
 0x168   :  { %v669_v43 = vadd.f32 %v1385_v59, %v668_v41 }
 0x169   :  { %v446_v44 = vmax.f32 %v266_v39, 0.0  ;;  %v447_v45 = vmax.f32 %v379_v40, 0.0 }
 0x16a   :  { %v782_v46 = vadd.f32 %v781_v42, %v669_v43 }
 0x16b   :  { %718 = vmatmul.f32.gmra.mxu2 %v446_v44  ;;  %831 = vmatmul.f32.gmra.mxu3 %v447_v45 }
 0x16c   :  { %855 = vst [vmem:[#allocation3 + $0x58] sm:$0xff] %v782_v46 }
 0x16e   :  { %v268_v47 = vpop.f32.mrf.mxu0  ;;  %v381_v48 = vpop.f32.mrf.mxu1 }
 0x16f   :  { %v269_v49 = vadd.f32 %v268_v47, %v1265_v60  ;;  %v382_v50 = vadd.f32 %v381_v48, %v1267_v61  ;;  %v671_v51 = vpop.f32.mrf.mxu2  ;;  %v784_v52 = vpop.f32.mrf.mxu3 }
 0x170   :  { %v672_v56 = vadd.f32 %v1385_v59, %v671_v51 }
 0x171   :  { %v448_v53 = vmax.f32 %v269_v49, 0.0  ;;  %v449_v57 = vmax.f32 %v382_v50, 0.0 }
 0x172   :  { %v785_v54 = vadd.f32 %v784_v52, %v672_v56 }
 0x173   :  { %721 = vmatmul.f32.gmra.mxu2 %v448_v53  ;;  %834 = vmatmul.f32.gmra.mxu3 %v449_v57 }
 0x174   :  { %856 = vst [vmem:[#allocation3 + $0x60] sm:$0xff] %v785_v54 }
 0x176   :  { %v271_v55 = vpop.f32.mrf.mxu0  ;;  %v384_v58 = vpop.f32.mrf.mxu1 }
 0x177   :  { %v272_v62 = vadd.f32 %v271_v55, %v1265_v60  ;;  %v385_v63 = vadd.f32 %v384_v58, %v1267_v61  ;;  %v674_v0 = vpop.f32.mrf.mxu2  ;;  %v787_v1 = vpop.f32.mrf.mxu3 }
 0x178   :  { %v675_v2 = vadd.f32 %v1385_v59, %v674_v0 }
 0x179   :  { %v450_v3 = vmax.f32 %v272_v62, 0.0  ;;  %v451_v4 = vmax.f32 %v385_v63, 0.0 }
 0x17a   :  { %v788_v5 = vadd.f32 %v787_v1, %v675_v2 }
 0x17b   :  { %724 = vmatmul.f32.gmra.mxu2 %v450_v3  ;;  %837 = vmatmul.f32.gmra.mxu3 %v451_v4 }
 0x17c   :  { %857 = vst [vmem:[#allocation3 + $0x68] sm:$0xff] %v788_v5 }
 0x17e   :  { %v274_v6 = vpop.f32.mrf.mxu0  ;;  %v387_v7 = vpop.f32.mrf.mxu1 }
 0x17f   :  { %v275_v8 = vadd.f32 %v274_v6, %v1265_v60  ;;  %v388_v9 = vadd.f32 %v387_v7, %v1267_v61  ;;  %v677_v10 = vpop.f32.mrf.mxu2  ;;  %v790_v11 = vpop.f32.mrf.mxu3 }
 0x180   :  { %v678_v12 = vadd.f32 %v1385_v59, %v677_v10 }
 0x181   :  { %v452_v13 = vmax.f32 %v275_v8, 0.0  ;;  %v453_v14 = vmax.f32 %v388_v9, 0.0 }
 0x182   :  { %v791_v15 = vadd.f32 %v790_v11, %v678_v12 }
 0x183   :  { %727 = vmatmul.f32.gmra.mxu2 %v452_v13  ;;  %840 = vmatmul.f32.gmra.mxu3 %v453_v14 }
 0x184   :  { %858 = vst [vmem:[#allocation3 + $0x70] sm:$0xff] %v791_v15 }
 0x186   :  { %v635_v16 = vpop.f32.mrf.mxu0  ;;  %v748_v60 = vpop.f32.mrf.mxu1 }
 0x187   :  { %v636_v17 = vadd.f32 %v1385_v59, %v635_v16  ;;  %v680_v18 = vpop.f32.mrf.mxu2  ;;  %v793_v19 = vpop.f32.mrf.mxu3 }
 0x188   :  { %v681_v20 = vadd.f32 %v1385_v59, %v680_v18 }
 0x189   :  { %v749_v21 = vadd.f32 %v748_v60, %v636_v17 }
 0x18a   :  { %v794_v61 = vadd.f32 %v793_v19, %v681_v20 }
 0x18b   :  { %844 = vst [vmem:[#allocation3] sm:$0xff] %v749_v21 }
 0x18c   :  { %859 = vst [vmem:[#allocation3 + $0x78] sm:$0xff] %v794_v61 }
 0x18f   :  { %v683_v22 = vpop.f32.mrf.mxu2  ;;  %v796_v23 = vpop.f32.mrf.mxu3 }
 0x190   :  { %v684_v24 = vadd.f32 %v1385_v59, %v683_v22 }
 0x192   :  { %v797_v25 = vadd.f32 %v796_v23, %v684_v24 }
 0x194   :  { %860 = vst [vmem:[#allocation3 + $0x80] sm:$0xff] %v797_v25 }
 0x197   :  { %v686_v26 = vpop.f32.mrf.mxu2  ;;  %v799_v27 = vpop.f32.mrf.mxu3 }
 0x198   :  { %v687_v28 = vadd.f32 %v1385_v59, %v686_v26 }
 0x19a   :  { %v800_v29 = vadd.f32 %v799_v27, %v687_v28 }
 0x19c   :  { %861 = vst [vmem:[#allocation3 + $0x88] sm:$0xff] %v800_v29 }
 0x19f   :  { %v689_v30 = vpop.f32.mrf.mxu2  ;;  %v802_v31 = vpop.f32.mrf.mxu3 }
 0x1a0   :  { %v690_v32 = vadd.f32 %v1385_v59, %v689_v30 }
 0x1a2   :  { %v803_v33 = vadd.f32 %v802_v31, %v690_v32 }
 0x1a4   :  { %862 = vst [vmem:[#allocation3 + $0x90] sm:$0xff] %v803_v33 }
 0x1a7   :  { %v692_v34 = vpop.f32.mrf.mxu2  ;;  %v805_v35 = vpop.f32.mrf.mxu3 }
 0x1a8   :  { %v693_v36 = vadd.f32 %v1385_v59, %v692_v34 }
 0x1aa   :  { %v806_v37 = vadd.f32 %v805_v35, %v693_v36 }
 0x1ac   :  { %863 = vst [vmem:[#allocation3 + $0x98] sm:$0xff] %v806_v37 }
 0x1af   :  { %v695_v38 = vpop.f32.mrf.mxu2  ;;  %v808_v39 = vpop.f32.mrf.mxu3 }
 0x1b0   :  { %v696_v40 = vadd.f32 %v1385_v59, %v695_v38 }
 0x1b2   :  { %v809_v41 = vadd.f32 %v808_v39, %v696_v40 }
 0x1b4   :  { %864 = vst [vmem:[#allocation3 + $0xa0] sm:$0xff] %v809_v41 }
 0x1b7   :  { %v698_v42 = vpop.f32.mrf.mxu2  ;;  %v811_v43 = vpop.f32.mrf.mxu3 }
 0x1b8   :  { %v699_v44 = vadd.f32 %v1385_v59, %v698_v42 }
 0x1ba   :  { %v812_v45 = vadd.f32 %v811_v43, %v699_v44 }
 0x1bc   :  { %865 = vst [vmem:[#allocation3 + $0xa8] sm:$0xff] %v812_v45 }
 0x1bf   :  { %v701_v46 = vpop.f32.mrf.mxu2  ;;  %v814_v47 = vpop.f32.mrf.mxu3 }
 0x1c0   :  { %v702_v48 = vadd.f32 %v1385_v59, %v701_v46 }
 0x1c2   :  { %v815_v49 = vadd.f32 %v814_v47, %v702_v48 }
 0x1c4   :  { %866 = vst [vmem:[#allocation3 + $0xb0] sm:$0xff] %v815_v49 }
 0x1c7   :  { %v704_v50 = vpop.f32.mrf.mxu2  ;;  %v817_v51 = vpop.f32.mrf.mxu3 }
 0x1c8   :  { %v705_v52 = vadd.f32 %v1385_v59, %v704_v50 }
 0x1ca   :  { %v818_v56 = vadd.f32 %v817_v51, %v705_v52 }
 0x1cc   :  { %867 = vst [vmem:[#allocation3 + $0xb8] sm:$0xff] %v818_v56 }
 0x1cf   :  { %v707_v53 = vpop.f32.mrf.mxu2  ;;  %v820_v57 = vpop.f32.mrf.mxu3 }
 0x1d0   :  { %v708_v54 = vadd.f32 %v1385_v59, %v707_v53 }
 0x1d2   :  { %v821_v55 = vadd.f32 %v820_v57, %v708_v54 }
 0x1d4   :  { %868 = vst [vmem:[#allocation3 + $0xc0] sm:$0xff] %v821_v55 }
 0x1d7   :  { %v710_v58 = vpop.f32.mrf.mxu2  ;;  %v823_v62 = vpop.f32.mrf.mxu3 }
 0x1d8   :  { %v711_v63 = vadd.f32 %v1385_v59, %v710_v58 }
 0x1da   :  { %v824_v0 = vadd.f32 %v823_v62, %v711_v63 }
 0x1dc   :  { %869 = vst [vmem:[#allocation3 + $0xc8] sm:$0xff] %v824_v0 }
 0x1df   :  { %v713_v1 = vpop.f32.mrf.mxu2  ;;  %v826_v2 = vpop.f32.mrf.mxu3 }
 0x1e0   :  { %v714_v3 = vadd.f32 %v1385_v59, %v713_v1 }
 0x1e2   :  { %v827_v4 = vadd.f32 %v826_v2, %v714_v3 }
 0x1e4   :  { %870 = vst [vmem:[#allocation3 + $0xd0] sm:$0xff] %v827_v4 }
 0x1e7   :  { %v716_v5 = vpop.f32.mrf.mxu2  ;;  %v829_v6 = vpop.f32.mrf.mxu3 }
 0x1e8   :  { %v717_v7 = vadd.f32 %v1385_v59, %v716_v5 }
 0x1ea   :  { %v830_v8 = vadd.f32 %v829_v6, %v717_v7 }
 0x1ec   :  { %871 = vst [vmem:[#allocation3 + $0xd8] sm:$0xff] %v830_v8 }
 0x1ef   :  { %v719_v9 = vpop.f32.mrf.mxu2  ;;  %v832_v10 = vpop.f32.mrf.mxu3 }
 0x1f0   :  { %v720_v11 = vadd.f32 %v1385_v59, %v719_v9 }
 0x1f2   :  { %v833_v12 = vadd.f32 %v832_v10, %v720_v11 }
 0x1f4   :  { %872 = vst [vmem:[#allocation3 + $0xe0] sm:$0xff] %v833_v12 }
 0x1f7   :  { %v722_v13 = vpop.f32.mrf.mxu2  ;;  %v835_v14 = vpop.f32.mrf.mxu3 }
 0x1f8   :  { %v723_v15 = vadd.f32 %v1385_v59, %v722_v13 }
 0x1fa   :  { %v836_v16 = vadd.f32 %v835_v14, %v723_v15 }
 0x1fc   :  { %873 = vst [vmem:[#allocation3 + $0xe8] sm:$0xff] %v836_v16 }
 0x1ff   :  { %v725_v17 = vpop.f32.mrf.mxu2  ;;  %v838_v18 = vpop.f32.mrf.mxu3 }
 0x200   :  { %v726_v19 = vadd.f32 %v1385_v59, %v725_v17 }
 0x202   :  { %v839_v20 = vadd.f32 %v838_v18, %v726_v19 }
 0x204   :  { %874 = vst [vmem:[#allocation3 + $0xf0] sm:$0xff] %v839_v20 }
 0x207   :  { %v728_v60 = vpop.f32.mrf.mxu2  ;;  %v841_v21 = vpop.f32.mrf.mxu3 }
 0x208   :  { %v729_v61 = vadd.f32 %v1385_v59, %v728_v60 }
 0x20a   :  { %v842_v22 = vadd.f32 %v841_v21, %v729_v61 }
 0x20c   :  { %875 = vst [vmem:[#allocation3 + $0xf8] sm:$0xff] %v842_v22 }
 0x20d   :  { %888 = dma.vmem_to_hbm [thread:$0]  %s881_s6, 4096, %s883_s9, [#allocation4], %s1021_s10, %s1021_s10, %s1022_s11  }
 0x20e   :  { %1018 = dma.done.wait [#allocation4], 4096  }
 0x20f   :  { %1019 = vsyncadd [#allocation4], 4294963200 }
 0x210   :  { %893 = vsyncpa [#allocation4], 1 }

</bundles_post_ra>
